<compile_context>
chip_gen: v6e
topology: v6e:2x2x1
jax: 0.10.0
libtpu: 0.0.40
codegen_flags: <defaults>
</compile_context>

<pallas_src>
import jax
import jax.numpy as jnp
import numpy as np
from jax import lax
from jax.experimental import pallas as pl
from jax.experimental.pallas import tpu as pltpu

# Problem sizes (module defaults, hidden=64)
B = 8            # batch
F = 4            # number of sparse features
ND = 3           # number of dense features
D = 32           # embedding_dim
A = 8            # attention_dim (1 head)
H = 64           # dnn hidden units
VOCAB = 20       # vocab size per sparse feature
V1 = VOCAB + 1   # table rows
V1P = 32         # padded table rows per feature (lane/sublane friendly)
FV = F * V1P     # 128 stacked, padded table rows
BF = B * F       # 32 per-(batch, feature) rows
NG = BF + B      # 40 rows of the combined one-hot / multi-hot gather LHS
QW = 4 * A       # 32 lanes of q|k|v|res in the gather slab
LRL = QW + H     # lane 96: LR-embedding column of the gather slab
NEG = -1e30      # finite mask value (not -inf) for the block-diag softmax mask

# Row offsets inside the packed small-weights slab (matmul slices 8-row aligned).
_R_W2 = 0          # (64, 64)  w2
_R_W3 = 64         # (64, 64)  w3
_R_FC = 128        # (32, 8)   fc_w tiled per (b, f) row
_R_W1D = 160       # (4, 65)   [w1d; b1] lanes 0..63, [lrw_d; fc_b+b4+lr_b] lane 64
_R_B2 = 164        # (1, 64)   b2
_R_B3 = 165        # (1, 64)   b3
_R_W4T = 166       # (1, 64)   w4 transposed
_R_MASK = 168      # (32, 32)  block-diagonal 0 / -1e30 softmax mask (constant)
_R_SEL = 200       # (8, 32)   per-batch row selector (constant)
WS_ROWS = 208

# Compile-time constants baked into the small-weights slab (review #5).
_rows_np = np.arange(BF) // F
_MASK_NP = np.where(_rows_np[:, None] == _rows_np[None, :], 0.0, NEG).astype(np.float32)
_SEL_NP = (np.arange(B)[:, None] == _rows_np[None, :]).astype(np.float32)


# ------------------------------ kernel ----------------------------------------
def autoint_kernel(xim_ref, tall_ref, ws_ref, out_ref):
    f32 = jnp.float32
    xim = xim_ref[...]                                              # (48, 128)

    # combined one-hot (rows 0..BF-1, per (b,f)) / multi-hot (rows BF.., per batch)
    idv = xim[0:NG, 0:F].astype(jnp.int32)                          # (40, 4); -1 = unused
    col = lax.broadcasted_iota(jnp.int32, (NG, FV), 1)
    comb = jnp.where(col == idv[:, 0:1], 1.0, 0.0)
    for j in range(1, F):
        comb = comb + jnp.where(col == idv[:, j:j + 1], 1.0, 0.0)   # (40, 128)

    # single fused gather matmul: embeddings pre-folded with Wq|Wk|Wv|Wres (lanes
    # 0..31), the DNN layer-1 weight (lanes 32..95) and lrw_e (lane 96).
    gall = jnp.dot(comb, tall_ref[...], preferred_element_type=f32)  # (40, 128)
    qkvr = gall[0:BF, :]            # per-(b,f) rows
    gsum = gall[BF:NG, :]           # per-batch rows (DNN / LR embedding sums)

    q = qkvr[:, 0 * A:1 * A]
    k = qkvr[:, 1 * A:2 * A]
    v = qkvr[:, 2 * A:3 * A]
    res = qkvr[:, 3 * A:4 * A]

    # ---- ScaledDotProductAttention core: softmax(Q K^T, dim=2) V ---------------
    # Batched bmm written as 2D matmuls + constant block-diagonal additive mask.
    scores = lax.dot_general(q, k, (((1,), (1,)), ((), ())),
                             preferred_element_type=f32)            # (BF, BF)
    scores = scores + ws_ref[_R_MASK:_R_MASK + BF, 0:BF]            # baked mask
    m = jnp.max(scores, axis=-1, keepdims=True)
    e = jnp.exp(scores - m)
    attn = e / jnp.sum(e, axis=-1, keepdims=True)                   # exact softmax
    att = jnp.dot(attn, v, preferred_element_type=f32) + res
    att = jnp.maximum(att, 0.0)                                     # +residual, relu

    # attention fc head: per-(b,f) dot with its fc_w slice, then per-batch reduce
    fcp = jnp.sum(att * ws_ref[_R_FC:_R_FC + BF, 0:A],
                  axis=-1, keepdims=True)                           # (BF, 1)
    rfc = jnp.dot(ws_ref[_R_SEL:_R_SEL + B, 0:BF], fcp,
                  preferred_element_type=f32)                       # (B, 1)

    # ---- DNN MLP (biases as VPU adds; no ones-column / lane concats) -----------
    xb = xim[NG:NG + B, :]                                          # per-batch rows
    dense1 = xb[:, 0:ND + 1]                                        # [dense, 1.0]
    label = xb[:, ND + 1:ND + 2]                                    # (B, 1)

    h1d = jnp.dot(dense1, ws_ref[_R_W1D:_R_W1D + ND + 1, :],
                  preferred_element_type=f32)                       # (B, 128)
    h1 = jnp.maximum(gsum[:, QW:QW + H] + h1d[:, 0:H], 0.0)         # (B, H)
    h2 = jnp.maximum(jnp.dot(h1, ws_ref[_R_W2:_R_W2 + H, 0:H],
                             preferred_element_type=f32)
                     + ws_ref[_R_B2:_R_B2 + 1, 0:H], 0.0)           # (B, H)
    h3 = jnp.maximum(jnp.dot(h2, ws_ref[_R_W3:_R_W3 + H, 0:H],
                             preferred_element_type=f32)
                     + ws_ref[_R_B3:_R_B3 + 1, 0:H], 0.0)           # (B, H)

    # ---- fused output head: mul + lane-reduce + VPU adds (no concat, no matmul) -
    y = (jnp.sum(h3 * ws_ref[_R_W4T:_R_W4T + 1, 0:H], axis=-1, keepdims=True)
         + h1d[:, H:H + 1]          # dense @ lrw_d + (fc_b + b4 + lr_b)
         + gsum[:, LRL:LRL + 1]     # lr_emb @ lrw_e
         + rfc)                     # attention fc head

    pred = jax.nn.sigmoid(y)
    pc = jnp.clip(pred, 1e-7, 1.0 - 1e-7)                           # BCE-safe clamp
    bce = -(label * jnp.log(pc) + (1.0 - label) * jnp.log(1.0 - pc))
    loss = jnp.sum(bce, axis=0, keepdims=True) * (1.0 / B)          # (1, 1)

    # lane-dense (B,128) output: lane 0 = pred, lane 1 = loss; one full store.
    lane = lax.broadcasted_iota(jnp.int32, (B, 128), 1)
    out_ref[...] = jnp.where(lane == 0, pred, jnp.where(lane == 1, loss, 0.0))


# ------------------------------ wrapper ----------------------------------------
def _pad_rows(t, rows):
    return jnp.concatenate(
        [t, jnp.zeros((rows - t.shape[0], t.shape[1]), jnp.float32)], axis=0)


def _pad_cols(t, cols):
    return jnp.concatenate(
        [t, jnp.zeros((t.shape[0], cols - t.shape[1]), jnp.float32)], axis=1)


def pack_params(p):
    """Parameter-only packing / folding (pure layout plumbing, runs in XLA)."""
    emb_pad = [_pad_rows(p['emb_tables'][f], V1P) for f in range(F)]     # (V1P, D) x F
    lr_pad = [_pad_rows(p['lr_emb_tables'][f], V1P) for f in range(F)]   # (V1P, 1) x F

    # big gather slab: embeddings folded with Wq|Wk|Wv|Wres, w1e and lrw_e
    t_stack = jnp.concatenate(emb_pad, axis=0)                           # (FV, D)
    w_qkvr = jnp.concatenate([p['wq'], p['wk'], p['wv'], p['wres']], axis=1)
    t_qkvr = t_stack @ w_qkvr                                            # (FV, 4A)
    tw1 = jnp.concatenate(
        [emb_pad[f] @ p['w1e'][f * D:(f + 1) * D, :] for f in range(F)], axis=0)
    lr_col = jnp.concatenate(
        [lr_pad[f] * p['lrw_e'][f, 0] for f in range(F)], axis=0)        # (FV, 1)
    t_all = jnp.concatenate(
        [t_qkvr, tw1, lr_col,
         jnp.zeros((FV, 128 - (QW + H + 1)), jnp.float32)], axis=1)      # (FV, 128)

    # small-weights slab (row offsets documented by the _R_* constants above)
    bias_sum = (p['fc_b'][0, 0] + p['b4'][0, 0] + p['lr_b'][0, 0]).reshape(1, 1)
    dhead = jnp.concatenate([p['lrw_d'], bias_sum], axis=0)              # (ND+1, 1)
    w1d_b1 = jnp.concatenate([p['w1d'], p['b1']], axis=0)                # (ND+1, H)
    blocks = [
        _pad_cols(p['w2'], 128),                                         # rows   0..63
        _pad_cols(p['w3'], 128),                                         # rows  64..127
        _pad_cols(jnp.tile(p['fc_w'].reshape(F, A), (B, 1)), 128),       # rows 128..159
        _pad_cols(jnp.concatenate([w1d_b1, dhead], axis=1), 128),        # rows 160..163
        _pad_cols(p['b2'], 128),                                         # row  164
        _pad_cols(p['b3'], 128),                                         # row  165
        _pad_cols(p['w4'].T, 128),                                       # row  166
        jnp.zeros((1, 128), jnp.float32),                                # row  167
        _pad_cols(jnp.asarray(_MASK_NP), 128),                           # rows 168..199
        _pad_cols(jnp.asarray(_SEL_NP), 128),                            # rows 200..207
    ]
    w_small = jnp.concatenate(blocks, axis=0)                            # (208, 128)
    return t_all, w_small


@jax.jit
def autoint_forward(params, sparse_ids, dense, label):
    t_all, w_small = pack_params(params)

    # activation slab: one-hot id rows, multi-hot id rows, per-batch side rows
    ids_off = (sparse_ids.astype(jnp.int32)
               + jnp.arange(F, dtype=jnp.int32)[None, :] * V1P)          # (B, F)
    row_1hot = jnp.concatenate(
        [ids_off.reshape(BF, 1).astype(jnp.float32),
         jnp.full((BF, F - 1), -1.0, jnp.float32)], axis=1)              # (BF, F)
    row_mhot = ids_off.astype(jnp.float32)                               # (B, F)
    row_side = jnp.concatenate(
        [dense, jnp.ones((B, 1), jnp.float32), label.reshape(B, 1)], axis=1)
    xim = jnp.concatenate(
        [_pad_cols(jnp.concatenate([row_1hot, row_mhot], axis=0), 128),
         _pad_cols(row_side, 128)], axis=0)                              # (48, 128)

    vmem = pl.BlockSpec(memory_space=pltpu.MemorySpace.VMEM)
    out = pl.pallas_call(
        autoint_kernel,
        out_shape=jax.ShapeDtypeStruct((B, 128), jnp.float32),
        in_specs=[vmem, vmem, vmem],
        out_specs=vmem,
    )(xim, t_all, w_small)

    pred = out[:, 0:1]
    loss = out[0:1, 1:2]
    return pred, loss


# ------------------------------ pure-JAX reference ----------------------------
def autoint_ref(params, sparse_ids, dense, label):
    feature_emb = jnp.stack(
        [params['emb_tables'][f][sparse_ids[:, f]] for f in range(F)], axis=1)
    lr_emb = jnp.stack(
        [params['lr_emb_tables'][f][sparse_ids[:, f]] for f in range(F)], axis=1)[..., 0]
    q = feature_emb @ params['wq']
    k = feature_emb @ params['wk']
    v = feature_emb @ params['wv']
    res = feature_emb @ params['wres']
    scores = jnp.einsum('bfa,bga->bfg', q, k)
    attn = jax.nn.softmax(scores, axis=-1)
    att_out = jnp.maximum(jnp.einsum('bfg,bga->bfa', attn, v) + res, 0.0)
    y = att_out.reshape(B, F * A) @ params['fc_w'] + params['fc_b']
    h = jnp.maximum(feature_emb.reshape(B, F * D) @ params['w1e']
                    + dense @ params['w1d'] + params['b1'], 0.0)
    h = jnp.maximum(h @ params['w2'] + params['b2'], 0.0)
    h = jnp.maximum(h @ params['w3'] + params['b3'], 0.0)
    y = y + h @ params['w4'] + params['b4']
    y = y + lr_emb @ params['lrw_e'] + dense @ params['lrw_d'] + params['lr_b']
    pred = jax.nn.sigmoid(y)
    lab = label.reshape(B, 1)
    pc = jnp.clip(pred, 1e-7, 1.0 - 1e-7)
    loss = jnp.mean(-(lab * jnp.log(pc) + (1 - lab) * jnp.log(1 - pc)))
    return pred, loss.reshape(1, 1)


# ------------------------------ params / main ---------------------------------
def xavier_normal(key, shape):
    fan_in, fan_out = shape[0], shape[1]
    std = (2.0 / (fan_in + fan_out)) ** 0.5
    return std * jax.random.normal(key, shape, dtype=jnp.float32)


def make_params(key):
    keys = jax.random.split(key, 32)
    ki = iter(range(32))
    p = {}
    p['emb_tables'] = [xavier_normal(keys[next(ki)], (V1, D)) for _ in range(F)]
    p['lr_emb_tables'] = [xavier_normal(keys[next(ki)], (V1, 1)) for _ in range(F)]
    p['wq'] = xavier_normal(keys[next(ki)], (D, A))
    p['wk'] = xavier_normal(keys[next(ki)], (D, A))
    p['wv'] = xavier_normal(keys[next(ki)], (D, A))
    p['wres'] = xavier_normal(keys[next(ki)], (D, A))
    p['fc_w'] = xavier_normal(keys[next(ki)], (F * A, 1))
    p['fc_b'] = jnp.zeros((1, 1), jnp.float32)
    p['w1e'] = xavier_normal(keys[next(ki)], (F * D, H))
    p['w1d'] = xavier_normal(keys[next(ki)], (ND, H))
    p['b1'] = jnp.zeros((1, H), jnp.float32)
    p['w2'] = xavier_normal(keys[next(ki)], (H, H))
    p['b2'] = jnp.zeros((1, H), jnp.float32)
    p['w3'] = xavier_normal(keys[next(ki)], (H, H))
    p['b3'] = jnp.zeros((1, H), jnp.float32)
    p['w4'] = xavier_normal(keys[next(ki)], (H, 1))
    p['b4'] = jnp.zeros((1, 1), jnp.float32)
    p['lrw_e'] = xavier_normal(keys[next(ki)], (F, 1))
    p['lrw_d'] = xavier_normal(keys[next(ki)], (ND, 1))
    p['lr_b'] = jnp.zeros((1, 1), jnp.float32)
    return p


if __name__ == "__main__":
    key = jax.random.PRNGKey(0)
    kp, ks, kd, kl = jax.random.split(key, 4)
    params = make_params(kp)

    sparse_ids = jax.random.randint(ks, (B, F), 0, V1, dtype=jnp.int32)
    dense = jax.random.uniform(kd, (B, ND), dtype=jnp.float32)
    label = jax.random.bernoulli(kl, 0.5, (B,)).astype(jnp.float32)

    pred, loss = autoint_forward(params, sparse_ids, dense, label)
    jax.block_until_ready((pred, loss))

    pred_r, loss_r = autoint_ref(params, sparse_ids, dense, label)
    assert jnp.allclose(pred, pred_r, rtol=2e-3, atol=2e-3), (pred, pred_r)
    assert jnp.allclose(loss, loss_r, rtol=2e-3, atol=2e-3), (loss, loss_r)

    print("KERNEL_OK")
</pallas_src>

<mosaic_0001>
module attributes {stable_mosaic.version = 11 : i64} {
  func.func @autoint_kernel(%arg0: memref<48x128xf32, #tpu.memory_space<vmem>>, %arg1: memref<128x128xf32, #tpu.memory_space<vmem>>, %arg2: memref<208x128xf32, #tpu.memory_space<vmem>>, %arg3: memref<8x128xf32, #tpu.memory_space<vmem>>) attributes {dimension_semantics = [], scalar_prefetch = 0 : i64, scratch_operands = 0 : i64, tpu.core_type = #tpu.core_type<tc>} {
    %c0 = arith.constant 0 : index
    %c0_0 = arith.constant 0 : index
    %0 = vector.load %arg0[%c0, %c0_0] : memref<48x128xf32, #tpu.memory_space<vmem>>, vector<48x128xf32>
    %1 = vector.extract_strided_slice %0 {offsets = [0, 0], sizes = [40, 4], strides = [1, 1]} : vector<48x128xf32> to vector<40x4xf32>
    %2 = arith.fptosi %1 : vector<40x4xf32> to vector<40x4xi32>
    %3 = tpu.iota {dimensions = array<i32: 1>} : vector<40x128xi32>
    %4 = vector.extract_strided_slice %2 {offsets = [0, 0], sizes = [40, 1], strides = [1, 1]} : vector<40x4xi32> to vector<40x1xi32>
    %5 = vector.broadcast %4 : vector<40x1xi32> to vector<40x128xi32>
    %6 = arith.cmpi eq, %3, %5 : vector<40x128xi32>
    %cst = arith.constant 1.000000e+00 : f32
    %cst_1 = arith.constant 0.000000e+00 : f32
    %7 = vector.broadcast %cst : f32 to vector<40x128xf32>
    %8 = vector.broadcast %cst_1 : f32 to vector<40x128xf32>
    %9 = arith.select %6, %7, %8 : vector<40x128xi1>, vector<40x128xf32>
    %10 = vector.extract_strided_slice %2 {offsets = [0, 1], sizes = [40, 1], strides = [1, 1]} : vector<40x4xi32> to vector<40x1xi32>
    %11 = vector.broadcast %10 : vector<40x1xi32> to vector<40x128xi32>
    %12 = arith.cmpi eq, %3, %11 : vector<40x128xi32>
    %cst_2 = arith.constant 1.000000e+00 : f32
    %cst_3 = arith.constant 0.000000e+00 : f32
    %13 = vector.broadcast %cst_2 : f32 to vector<40x128xf32>
    %14 = vector.broadcast %cst_3 : f32 to vector<40x128xf32>
    %15 = arith.select %12, %13, %14 : vector<40x128xi1>, vector<40x128xf32>
    %16 = arith.addf %9, %15 : vector<40x128xf32>
    %17 = vector.extract_strided_slice %2 {offsets = [0, 2], sizes = [40, 1], strides = [1, 1]} : vector<40x4xi32> to vector<40x1xi32>
    %18 = vector.broadcast %17 : vector<40x1xi32> to vector<40x128xi32>
    %19 = arith.cmpi eq, %3, %18 : vector<40x128xi32>
    %cst_4 = arith.constant 1.000000e+00 : f32
    %cst_5 = arith.constant 0.000000e+00 : f32
    %20 = vector.broadcast %cst_4 : f32 to vector<40x128xf32>
    %21 = vector.broadcast %cst_5 : f32 to vector<40x128xf32>
    %22 = arith.select %19, %20, %21 : vector<40x128xi1>, vector<40x128xf32>
    %23 = arith.addf %16, %22 : vector<40x128xf32>
    %24 = vector.extract_strided_slice %2 {offsets = [0, 3], sizes = [40, 1], strides = [1, 1]} : vector<40x4xi32> to vector<40x1xi32>
    %25 = vector.broadcast %24 : vector<40x1xi32> to vector<40x128xi32>
    %26 = arith.cmpi eq, %3, %25 : vector<40x128xi32>
    %cst_6 = arith.constant 1.000000e+00 : f32
    %cst_7 = arith.constant 0.000000e+00 : f32
    %27 = vector.broadcast %cst_6 : f32 to vector<40x128xf32>
    %28 = vector.broadcast %cst_7 : f32 to vector<40x128xf32>
    %29 = arith.select %26, %27, %28 : vector<40x128xi1>, vector<40x128xf32>
    %30 = arith.addf %23, %29 : vector<40x128xf32>
    %c0_8 = arith.constant 0 : index
    %c0_9 = arith.constant 0 : index
    %31 = vector.load %arg1[%c0_8, %c0_9] : memref<128x128xf32, #tpu.memory_space<vmem>>, vector<128x128xf32>
    %cst_10 = arith.constant dense<0.000000e+00> : vector<40x128xf32>
    %32 = tpu.matmul %30, %31, %cst_10 {dimension_numbers = #tpu.dot_dimension_numbers<[1], [0], [0], [1], [0, 0, 1, 1], [], []>} : vector<40x128xf32>, vector<128x128xf32>, vector<40x128xf32> -> vector<40x128xf32>
    %33 = vector.extract_strided_slice %32 {offsets = [0, 0], sizes = [32, 128], strides = [1, 1]} : vector<40x128xf32> to vector<32x128xf32>
    %34 = vector.extract_strided_slice %32 {offsets = [32, 0], sizes = [8, 128], strides = [1, 1]} : vector<40x128xf32> to vector<8x128xf32>
    %35 = vector.extract_strided_slice %33 {offsets = [0, 0], sizes = [32, 8], strides = [1, 1]} : vector<32x128xf32> to vector<32x8xf32>
    %36 = vector.extract_strided_slice %33 {offsets = [0, 8], sizes = [32, 8], strides = [1, 1]} : vector<32x128xf32> to vector<32x8xf32>
    %37 = vector.extract_strided_slice %33 {offsets = [0, 16], sizes = [32, 8], strides = [1, 1]} : vector<32x128xf32> to vector<32x8xf32>
    %38 = vector.extract_strided_slice %33 {offsets = [0, 24], sizes = [32, 8], strides = [1, 1]} : vector<32x128xf32> to vector<32x8xf32>
    %cst_11 = arith.constant dense<0.000000e+00> : vector<32x32xf32>
    %39 = tpu.matmul %35, %36, %cst_11 {dimension_numbers = #tpu.dot_dimension_numbers<[1], [1], [0], [0], [0, 0, 1, 0], [], []>} : vector<32x8xf32>, vector<32x8xf32>, vector<32x32xf32> -> vector<32x32xf32>
    %c168 = arith.constant 168 : index
    %c0_12 = arith.constant 0 : index
    %40 = vector.load %arg2[%c168, %c0_12] : memref<208x128xf32, #tpu.memory_space<vmem>>, vector<32x32xf32>
    %41 = arith.addf %39, %40 : vector<32x32xf32>
    %cst_13 = arith.constant dense<0xFF800000> : vector<32xf32>
    %42 = vector.multi_reduction <maximumf>, %41, %cst_13 [1] : vector<32x32xf32> to vector<32xf32>
    %43 = vector.shape_cast %42 : vector<32xf32> to vector<32x1xf32>
    %44 = vector.broadcast %43 : vector<32x1xf32> to vector<32x32xf32>
    %45 = arith.subf %41, %44 : vector<32x32xf32>
    %46 = math.exp %45 : vector<32x32xf32>
    %cst_14 = arith.constant dense<0.000000e+00> : vector<32xf32>
    %47 = vector.multi_reduction <add>, %46, %cst_14 [1] : vector<32x32xf32> to vector<32xf32>
    %48 = vector.shape_cast %47 : vector<32xf32> to vector<32x1xf32>
    %49 = vector.broadcast %48 : vector<32x1xf32> to vector<32x32xf32>
    %50 = arith.divf %46, %49 : vector<32x32xf32>
    %cst_15 = arith.constant dense<0.000000e+00> : vector<32x8xf32>
    %51 = tpu.matmul %50, %37, %cst_15 {dimension_numbers = #tpu.dot_dimension_numbers<[1], [0], [0], [1], [0, 0, 1, 1], [], []>} : vector<32x32xf32>, vector<32x8xf32>, vector<32x8xf32> -> vector<32x8xf32>
    %52 = arith.addf %51, %38 : vector<32x8xf32>
    %cst_16 = arith.constant 0.000000e+00 : f32
    %53 = vector.broadcast %cst_16 : f32 to vector<32x8xf32>
    %54 = arith.maximumf %52, %53 : vector<32x8xf32>
    %c128 = arith.constant 128 : index
    %c0_17 = arith.constant 0 : index
    %55 = vector.load %arg2[%c128, %c0_17] : memref<208x128xf32, #tpu.memory_space<vmem>>, vector<32x8xf32>
    %56 = arith.mulf %54, %55 : vector<32x8xf32>
    %cst_18 = arith.constant dense<0.000000e+00> : vector<32xf32>
    %57 = vector.multi_reduction <add>, %56, %cst_18 [1] : vector<32x8xf32> to vector<32xf32>
    %58 = vector.shape_cast %57 : vector<32xf32> to vector<32x1xf32>
    %c200 = arith.constant 200 : index
    %c0_19 = arith.constant 0 : index
    %59 = vector.load %arg2[%c200, %c0_19] : memref<208x128xf32, #tpu.memory_space<vmem>>, vector<8x32xf32>
    %cst_20 = arith.constant dense<0.000000e+00> : vector<8x1xf32>
    %60 = tpu.matmul %59, %58, %cst_20 {dimension_numbers = #tpu.dot_dimension_numbers<[1], [0], [0], [1], [0, 0, 1, 1], [], []>} : vector<8x32xf32>, vector<32x1xf32>, vector<8x1xf32> -> vector<8x1xf32>
    %61 = vector.extract_strided_slice %0 {offsets = [40, 0], sizes = [8, 128], strides = [1, 1]} : vector<48x128xf32> to vector<8x128xf32>
    %62 = vector.extract_strided_slice %61 {offsets = [0, 0], sizes = [8, 4], strides = [1, 1]} : vector<8x128xf32> to vector<8x4xf32>
    %63 = vector.extract_strided_slice %61 {offsets = [0, 4], sizes = [8, 1], strides = [1, 1]} : vector<8x128xf32> to vector<8x1xf32>
    %c160 = arith.constant 160 : index
    %c0_21 = arith.constant 0 : index
    %64 = vector.load %arg2[%c160, %c0_21] : memref<208x128xf32, #tpu.memory_space<vmem>>, vector<4x128xf32>
    %cst_22 = arith.constant dense<0.000000e+00> : vector<8x128xf32>
    %65 = tpu.matmul %62, %64, %cst_22 {dimension_numbers = #tpu.dot_dimension_numbers<[1], [0], [0], [1], [0, 0, 1, 1], [], []>} : vector<8x4xf32>, vector<4x128xf32>, vector<8x128xf32> -> vector<8x128xf32>
    %66 = vector.extract_strided_slice %34 {offsets = [0, 32], sizes = [8, 64], strides = [1, 1]} : vector<8x128xf32> to vector<8x64xf32>
    %67 = vector.extract_strided_slice %65 {offsets = [0, 0], sizes = [8, 64], strides = [1, 1]} : vector<8x128xf32> to vector<8x64xf32>
    %68 = arith.addf %66, %67 : vector<8x64xf32>
    %cst_23 = arith.constant 0.000000e+00 : f32
    %69 = vector.broadcast %cst_23 : f32 to vector<8x64xf32>
    %70 = arith.maximumf %68, %69 : vector<8x64xf32>
    %c0_24 = arith.constant 0 : index
    %c0_25 = arith.constant 0 : index
    %71 = vector.load %arg2[%c0_24, %c0_25] : memref<208x128xf32, #tpu.memory_space<vmem>>, vector<64x64xf32>
    %cst_26 = arith.constant dense<0.000000e+00> : vector<8x64xf32>
    %72 = tpu.matmul %70, %71, %cst_26 {dimension_numbers = #tpu.dot_dimension_numbers<[1], [0], [0], [1], [0, 0, 1, 1], [], []>} : vector<8x64xf32>, vector<64x64xf32>, vector<8x64xf32> -> vector<8x64xf32>
    %c164 = arith.constant 164 : index
    %c0_27 = arith.constant 0 : index
    %73 = vector.load %arg2[%c164, %c0_27] : memref<208x128xf32, #tpu.memory_space<vmem>>, vector<1x64xf32>
    %74 = vector.broadcast %73 : vector<1x64xf32> to vector<8x64xf32>
    %75 = arith.addf %72, %74 : vector<8x64xf32>
    %cst_28 = arith.constant 0.000000e+00 : f32
    %76 = vector.broadcast %cst_28 : f32 to vector<8x64xf32>
    %77 = arith.maximumf %75, %76 : vector<8x64xf32>
    %c64 = arith.constant 64 : index
    %c0_29 = arith.constant 0 : index
    %78 = vector.load %arg2[%c64, %c0_29] : memref<208x128xf32, #tpu.memory_space<vmem>>, vector<64x64xf32>
    %cst_30 = arith.constant dense<0.000000e+00> : vector<8x64xf32>
    %79 = tpu.matmul %77, %78, %cst_30 {dimension_numbers = #tpu.dot_dimension_numbers<[1], [0], [0], [1], [0, 0, 1, 1], [], []>} : vector<8x64xf32>, vector<64x64xf32>, vector<8x64xf32> -> vector<8x64xf32>
    %c165 = arith.constant 165 : index
    %c0_31 = arith.constant 0 : index
    %80 = vector.load %arg2[%c165, %c0_31] : memref<208x128xf32, #tpu.memory_space<vmem>>, vector<1x64xf32>
    %81 = vector.broadcast %80 : vector<1x64xf32> to vector<8x64xf32>
    %82 = arith.addf %79, %81 : vector<8x64xf32>
    %cst_32 = arith.constant 0.000000e+00 : f32
    %83 = vector.broadcast %cst_32 : f32 to vector<8x64xf32>
    %84 = arith.maximumf %82, %83 : vector<8x64xf32>
    %c166 = arith.constant 166 : index
    %c0_33 = arith.constant 0 : index
    %85 = vector.load %arg2[%c166, %c0_33] : memref<208x128xf32, #tpu.memory_space<vmem>>, vector<1x64xf32>
    %86 = vector.broadcast %85 : vector<1x64xf32> to vector<8x64xf32>
    %87 = arith.mulf %84, %86 : vector<8x64xf32>
    %cst_34 = arith.constant dense<0.000000e+00> : vector<8xf32>
    %88 = vector.multi_reduction <add>, %87, %cst_34 [1] : vector<8x64xf32> to vector<8xf32>
    %89 = vector.shape_cast %88 : vector<8xf32> to vector<8x1xf32>
    %90 = vector.extract_strided_slice %65 {offsets = [0, 64], sizes = [8, 1], strides = [1, 1]} : vector<8x128xf32> to vector<8x1xf32>
    %91 = arith.addf %89, %90 : vector<8x1xf32>
    %92 = vector.extract_strided_slice %34 {offsets = [0, 96], sizes = [8, 1], strides = [1, 1]} : vector<8x128xf32> to vector<8x1xf32>
    %93 = arith.addf %91, %92 : vector<8x1xf32>
    %94 = arith.addf %93, %60 : vector<8x1xf32>
    %95 = arith.negf %94 : vector<8x1xf32>
    %96 = math.exp %95 : vector<8x1xf32>
    %cst_35 = arith.constant 1.000000e+00 : f32
    %97 = vector.broadcast %cst_35 : f32 to vector<8x1xf32>
    %98 = arith.addf %97, %96 : vector<8x1xf32>
    %99 = arith.divf %97, %98 : vector<8x1xf32>
    %cst_36 = arith.constant 1.000000e-07 : f32
    %cst_37 = arith.constant 0.99999988 : f32
    %100 = vector.broadcast %cst_36 : f32 to vector<8x1xf32>
    %101 = arith.maximumf %100, %99 : vector<8x1xf32>
    %102 = vector.broadcast %cst_37 : f32 to vector<8x1xf32>
    %103 = arith.minimumf %102, %101 : vector<8x1xf32>
    %104 = math.log %103 : vector<8x1xf32>
    %105 = arith.mulf %63, %104 : vector<8x1xf32>
    %cst_38 = arith.constant 1.000000e+00 : f32
    %106 = vector.broadcast %cst_38 : f32 to vector<8x1xf32>
    %107 = arith.subf %106, %63 : vector<8x1xf32>
    %cst_39 = arith.constant 1.000000e+00 : f32
    %108 = vector.broadcast %cst_39 : f32 to vector<8x1xf32>
    %109 = arith.subf %108, %103 : vector<8x1xf32>
    %110 = math.log %109 : vector<8x1xf32>
    %111 = arith.mulf %107, %110 : vector<8x1xf32>
    %112 = arith.addf %105, %111 : vector<8x1xf32>
    %cst_40 = arith.constant 0.000000e+00 : f32
    %113 = vector.broadcast %cst_40 : f32 to vector<8x1xf32>
    %114 = arith.subf %113, %112 : vector<8x1xf32>
    %cst_41 = arith.constant dense<0.000000e+00> : vector<1xf32>
    %115 = vector.multi_reduction <add>, %114, %cst_41 [0] : vector<8x1xf32> to vector<1xf32>
    %116 = vector.shape_cast %115 : vector<1xf32> to vector<1x1xf32>
    %cst_42 = arith.constant 1.250000e-01 : f32
    %117 = vector.broadcast %cst_42 : f32 to vector<1x1xf32>
    %118 = arith.mulf %116, %117 : vector<1x1xf32>
    %119 = tpu.iota {dimensions = array<i32: 1>} : vector<8x128xi32>
    %c0_i32 = arith.constant 0 : i32
    %120 = vector.broadcast %c0_i32 : i32 to vector<8x128xi32>
    %121 = arith.cmpi eq, %119, %120 : vector<8x128xi32>
    %c1_i32 = arith.constant 1 : i32
    %122 = vector.broadcast %c1_i32 : i32 to vector<8x128xi32>
    %123 = arith.cmpi eq, %119, %122 : vector<8x128xi32>
    %cst_43 = arith.constant 0.000000e+00 : f32
    %124 = vector.shape_cast %118 : vector<1x1xf32> to vector<1x1xf32>
    %125 = vector.broadcast %124 : vector<1x1xf32> to vector<8x128xf32>
    %126 = vector.broadcast %cst_43 : f32 to vector<8x128xf32>
    %127 = arith.select %123, %125, %126 : vector<8x128xi1>, vector<8x128xf32>
    %128 = vector.shape_cast %99 : vector<8x1xf32> to vector<8x1xf32>
    %129 = vector.broadcast %128 : vector<8x1xf32> to vector<8x128xf32>
    %130 = arith.select %121, %129, %127 : vector<8x128xi1>, vector<8x128xf32>
    %c0_44 = arith.constant 0 : index
    %c0_45 = arith.constant 0 : index
    %131 = vector.load %arg3[%c0_44, %c0_45] : memref<8x128xf32, #tpu.memory_space<vmem>>, vector<8x128xf32>
    tpu.vector_store %arg3[%c0_44, %c0_45], %130 {strides = array<i32>} : memref<8x128xf32, #tpu.memory_space<vmem>>, vector<8x128xf32>,
    return
  }
}

</mosaic_0001>

<bundles_post_ra>
// kernel: autoint_forward.1
= control target key start
LH: loop header
LB: loop body
LE: loop exit
PB: predicated region body
PF: predicated region fallthrough
CT: control target
= control target key end

     0   :  { %v1247_v0 = vmov 2   ;;  %v1248_v1 = vmov 0   ;;  %v1249_v5 = vmov 0.0   ;;  %v1250_v14 = vmov 3   ;;  %s1254_s6 = smov 112   ;;  %s1255_s7 = smov 104   ;;  %s1622_s0 = inlined_call_operand.vmem [shape: f32[48,128], index: 0, kind: input, shape index: {}]   ;;  %s1623_s1 = inlined_call_operand.vmem [shape: f32[128,128], index: 1, kind: input, shape index: {}]   ;;  %s1624_s2 = inlined_call_operand.vmem [shape: f32[208,128], index: 2, kind: input, shape index: {}]   ;;  %s1625_s3 = inlined_call_operand.vmem [shape: f32[8,128], index: 3, kind: output, shape index: {}]  }
   0x1   :  { %1204 = vset.pattern.permute.xlu1 %v1247_v0  ;;  %1203 = vset.pattern.permute.xlu0 %v1248_v1  ;;  %v14_v2 = vld [vmem:[%s1622_s0] sm:$0xff]  ;;  %v15_v3 = vld [vmem:[%s1622_s0 + $0x8] sm:$0xff]  ;;  %v157_v6 = vld [vmem:[%s1623_s1 + $0x78] sm:$0xff]  ;;  %v1251_v18 = vmov 1   ;;  %vm1252_vm0 = vmmov 0   ;;  %v25_v35 = vlaneseq  ;;  %s1256_s26 = smov 32  }
   0x2   :  { %v1178_v4 = vtrunc.f32 %v14_v2  ;;  %1049 = vmatprep.subr.mxu0 %v1249_v5  ;;  %v156_v7 = vld [vmem:[%s1623_s1 + $0x70] sm:$0xff]  ;;  %v1180_v8 = vtrunc.f32 %v15_v3  ;;  %v155_v10 = vld [vmem:[%s1623_s1 + $0x68] sm:$0xff]  ;;  %v154_v13 = vld [vmem:[%s1623_s1 + $0x60] sm:$0xff]  ;;  %1081 = vmatprep.mubr.msk.f32.mxu0 %vm1252_vm0, %v1249_v5  ;;  %s1257_s8 = smov 96   ;;  %s1258_s13 = smov 64  }
   0x3   :  { %1050 = vmatpush3.msra.mxu0 %v157_v6  ;;  %v16_v12 = vld [vmem:[%s1622_s0 + $0x10] sm:$0xff]  ;;  %v153_v15 = vld [vmem:[%s1623_s1 + $0x58] sm:$0xff]  ;;  %v151_v22 = vld [vmem:[%s1623_s1 + $0x48] sm:$0xff]  ;;  %v1373_v36 = vand.u32 127, %v25_v35 }
   0x4   :  { %v1179_v9 = vcvt.f32.s32 %v1178_v4  ;;  %1051 = vmatprep.subr.mxu0 %v1249_v5  ;;  %v1181_v11 = vcvt.f32.s32 %v1180_v8  ;;  %v1182_v16 = vtrunc.f32 %v16_v12  ;;  %v17_v17 = vld [vmem:[%s1622_s0 + $0x18] sm:$0xff]  ;;  %v152_v19 = vld [vmem:[%s1623_s1 + $0x50] sm:$0xff]  ;;  %v150_v23 = vld [vmem:[%s1623_s1 + $0x40] sm:$0xff] }
   0x5   :  { %1052 = vmatpush3.msra.mxu0 %v156_v7  ;;  %v1184_v21 = vtrunc.f32 %v17_v17  ;;  %v149_v25 = vld [vmem:[%s1623_s1 + $0x38] sm:$0xff]  ;;  %v148_v26 = vld [vmem:[%s1623_s1 + $0x30] sm:$0xff]  ;;  %v147_v27 = vld [vmem:[%s1623_s1 + $0x28] sm:$0xff] }
   0x6   :  { %83 = vperm.xlu1 %1204, %v1179_v9   ;;  %28 = vperm.xlu0 %1203, %v1179_v9   ;;  %v1183_v20 = vcvt.f32.s32 %v1182_v16  ;;  %v146_v28 = vld [vmem:[%s1623_s1 + $0x20] sm:$0xff]  ;;  %v145_v29 = vld [vmem:[%s1623_s1 + $0x18] sm:$0xff]  ;;  %v144_v30 = vld [vmem:[%s1623_s1 + $0x10] sm:$0xff] }
   0x7   :  { %1053 = vmatprep.subr.mxu0 %v1249_v5  ;;  %v1185_v24 = vcvt.f32.s32 %v1184_v21  ;;  %v143_v31 = vld [vmem:[%s1623_s1 + $0x8] sm:$0xff]  ;;  %v142_v32 = vld [vmem:[%s1623_s1] sm:$0xff]  ;;  %s1253_s1 = smov 120  }
   0x8   :  { %1054 = vmatpush3.msra.mxu0 %v155_v10  ;;  %v251_v35 = vld [vmem:[%s1624_s2 + $0xc0] sm:$0xff] }
   0x9   :  { %1055 = vmatprep.subr.mxu0 %v1249_v5 }
   0xa   :  { %1205 = vset.pattern.permute.xlu1 %v1248_v1  ;;  %1207 = vset.pattern.permute.xlu0 %v1250_v14 }
   0xb   :  { %31 = vperm.xlu1 %1205, %v1181_v11   ;;  %113 = vperm.xlu0 %1207, %v1179_v9  }
   0xc   :  { %1056 = vmatpush3.msra.mxu0 %v154_v13 }
   0xd   :  { %1057 = vmatprep.subr.mxu0 %v1249_v5 }
   0xe   :  { %1058 = vmatpush3.msra.mxu0 %v153_v15 }
   0xf   :  { %1206 = vset.pattern.permute.xlu1 %v1251_v18  ;;  %1208 = vset.pattern.permute.xlu0 %v1251_v18 }
  0x10   :  { %56 = vperm.xlu1 %1206, %v1181_v11   ;;  %53 = vperm.xlu0 %1208, %v1179_v9  }
  0x11   :  { %1059 = vmatprep.subr.mxu0 %v1249_v5 }
  0x12   :  { %1060 = vmatpush3.msra.mxu0 %v152_v19 }
  0x13   :  { %1061 = vmatprep.subr.mxu0 %v1249_v5 }
  0x14   :  { %1209 = vset.pattern.permute.xlu1 %v1247_v0  ;;  %59 = vperm.xlu0 %1208, %v1183_v20  }
  0x15   :  { %86 = vperm.xlu1 %1209, %v1181_v11   ;;  %1062 = vmatpush3.msra.mxu0 %v151_v22 }
  0x16   :  { %1063 = vmatprep.subr.mxu0 %v1249_v5 }
  0x17   :  { %1064 = vmatpush3.msra.mxu0 %v150_v23 }
  0x18   :  { %1213 = vset.pattern.permute.xlu0 %v1248_v1  ;;  %1065 = vmatprep.subr.mxu0 %v1249_v5 }
  0x19   :  { %1210 = vset.pattern.permute.xlu1 %v1248_v1  ;;  %37 = vperm.xlu0 %1213, %v1185_v24  }
  0x1a   :  { %34 = vperm.xlu1 %1210, %v1183_v20   ;;  %1066 = vmatpush3.msra.mxu0 %v149_v25 }
  0x1b   :  { %1067 = vmatprep.subr.mxu0 %v1249_v5 }
  0x1c   :  { %1068 = vmatpush3.msra.mxu0 %v148_v26 }
  0x1d   :  { %1216 = vset.pattern.permute.xlu0 %v1247_v0  ;;  %1069 = vmatprep.subr.mxu0 %v1249_v5 }
  0x1e   :  { %1211 = vset.pattern.permute.xlu1 %v1250_v14  ;;  %92 = vperm.xlu0 %1216, %v1185_v24  }
  0x1f   :  { %116 = vperm.xlu1 %1211, %v1181_v11   ;;  %1070 = vmatpush3.msra.mxu0 %v147_v27 }
  0x20   :  { %1071 = vmatprep.subr.mxu0 %v1249_v5 }
  0x21   :  { %1072 = vmatpush3.msra.mxu0 %v146_v28 }
  0x22   :  { %1073 = vmatprep.subr.mxu0 %v1249_v5  ;;  %1217 = vset.pattern.permute.xlu0 %v1248_v1 }
  0x23   :  { %1212 = vset.pattern.permute.xlu1 %v1247_v0  ;;  %1074 = vmatpush3.msra.mxu0 %v145_v29 }
  0x24   :  { %89 = vperm.xlu1 %1212, %v1183_v20   ;;  %1075 = vmatprep.subr.mxu0 %v1249_v5 }
  0x25   :  { %1076 = vmatpush3.msra.mxu0 %v144_v30  ;;  %v249_v30 = vld [vmem:[%s1624_s2 + $0xb0] sm:$0xff] }
  0x26   :  { %1077 = vmatprep.subr.mxu0 %v1249_v5 }
  0x27   :  { %1078 = vmatpush3.msra.mxu0 %v143_v31 }
  0x28   :  { %1214 = vset.pattern.permute.xlu1 %v1251_v18  ;;  %1079 = vmatprep.subr.mxu0 %v1249_v5 }
  0x29   :  { %62 = vperm.xlu1 %1214, %v1185_v24   ;;  %1080 = vmatpush3.msra.mxu0 %v142_v32  ;;  %v248_v32 = vld [vmem:[%s1624_s2 + $0xa8] sm:$0xff] }
  0x2a   :  { %1140 = vmatprep.subr.mxu0 %v1249_v5 }
  0x2d   :  { %1215 = vset.pattern.permute.xlu1 %v1250_v14 }
  0x2e   :  { %119 = vperm.xlu1 %1215, %v1183_v20  }
  0x32   :  { %122 = vperm.xlu1 %1215, %v1185_v24  }
  0x36   :  { %1218 = vset.pattern.permute.xlu1 %v1251_v18 }
  0x81   :  { %v84_v33 = vpop.permute.xlu1 %83  ;;  %v29_v34 = vpop.permute.xlu0 %28 }
  0x82   :  { %vm42_vm1 = vcmp.eq.s32.totalorder %v1373_v36, %v29_v34  ;;  %vm97_vm2 = vcmp.eq.s32.totalorder %v1373_v36, %v84_v33 }
  0x83   :  { %v47_v39 = vsel %vm42_vm1, 1.0, %v1249_v5  ;;  %v102_v44 = vsel %vm97_vm2, 1.0, %v1249_v5  ;;  %vm264_vm2 = vcmask 64512  }
  0x86   :  { %v32_v37 = vpop.permute.xlu1 %31  ;;  %v114_v38 = vpop.permute.xlu0 %113 }
  0x87   :  { %vm127_vm3 = vcmp.eq.s32.totalorder %v1373_v36, %v114_v38  ;;  %vm43_vm6 = vcmp.eq.s32.totalorder %v1373_v36, %v32_v37 }
  0x88   :  { %v132_v45 = vsel %vm127_vm3, 1.0, %v1249_v5  ;;  %v48_v51 = vsel %vm43_vm6, 1.0, %v1249_v5  ;;  %vm366_vm3 = vcmask 261120   ;;  %vm631_vm6 = vcmask 31744  }
  0x8b   :  { %v57_v40 = vpop.permute.xlu1 %56  ;;  %v54_v41 = vpop.permute.xlu0 %53 }
  0x8c   :  { %vm67_vm4 = vcmp.eq.s32.totalorder %v1373_v36, %v54_v41  ;;  %vm68_vm5 = vcmp.eq.s32.totalorder %v1373_v36, %v57_v40  ;;  %v250_v40 = vld [vmem:[%s1624_s2 + $0xb8] sm:$0xff] }
  0x8d   :  { %v72_v42 = vsel %vm67_vm4, 1.0, %v1249_v5  ;;  %v73_v50 = vsel %vm68_vm5, 1.0, %v1249_v5  ;;  %vm635_vm4 = vcmask 1043456  }
  0x8e   :  { %v77_v43 = vadd.f32 %v72_v42, %v47_v39  ;;  %v78_v53 = vadd.f32 %v73_v50, %v48_v51 }
  0x8f   :  { %v60_v56 = vpop.permute.xlu0 %59 }
  0x90   :  { %v107_v46 = vadd.f32 %v102_v44, %v77_v43  ;;  %v87_v47 = vpop.permute.xlu1 %86  ;;  %vm69_vm10 = vcmp.eq.s32.totalorder %v1373_v36, %v60_v56 }
  0x91   :  { %vm98_vm7 = vcmp.eq.s32.totalorder %v1373_v36, %v87_v47  ;;  %v74_v63 = vsel %vm69_vm10, 1.0, %v1249_v5  ;;  %vm938_vm10 = vcmask 39968  }
  0x92   :  { %v137_v48 = vadd.f32 %v132_v45, %v107_v46  ;;  %v103_v52 = vsel %vm98_vm7, 1.0, %v1249_v5 }
  0x93   :  { %v108_v55 = vadd.f32 %v103_v52, %v78_v53 }
  0x94   :  { %1082 = vmatmul.mubr.f32.vlgmr.msra.gmra.mxu0 %v137_v48  ;;  %v38_v60 = vpop.permute.xlu0 %37 }
  0x95   :  { %v35_v49 = vpop.permute.xlu1 %34  ;;  %1084 = vmatprep.mubr.msk.f32.mxu0 %vm1252_vm0, %v1249_v5  ;;  %vm45_vm12 = vcmp.eq.s32.totalorder %v1373_v36, %v38_v60 }
  0x96   :  { %vm44_vm9 = vcmp.eq.s32.totalorder %v1373_v36, %v35_v49  ;;  %v50_v3 = vsel %vm45_vm12, 1.0, %v1249_v5  ;;  %vm947_vm12 = vcmp.eq.s32.totalorder %v1373_v36, 0 }
  0x97   :  { %v49_v62 = vsel %vm44_vm9, 1.0, %v1249_v5 }
  0x98   :  { %v79_v6 = vadd.f32 %v74_v63, %v49_v62 }
  0x99   :  { %v93_v1 = vpop.permute.xlu0 %92 }
  0x9a   :  { %v117_v54 = vpop.permute.xlu1 %116  ;;  %vm100_vm14 = vcmp.eq.s32.totalorder %v1373_v36, %v93_v1 }
  0x9b   :  { %vm128_vm8 = vcmp.eq.s32.totalorder %v1373_v36, %v117_v54  ;;  %v105_v10 = vsel %vm100_vm14, 1.0, %v1249_v5 }
  0x9c   :  { %v133_v57 = vsel %vm128_vm8, 1.0, %v1249_v5 }
  0x9d   :  { %v138_v58 = vadd.f32 %v133_v57, %v108_v55 }
  0x9f   :  { %v90_v59 = vpop.permute.xlu1 %89  ;;  %1085 = vmatmul.mubr.f32.gmra.mxu0 %v138_v58 }
  0xa0   :  { %1087 = vmatprep.mubr.msk.f32.mxu0 %vm1252_vm0, %v1249_v5  ;;  %vm99_vm11 = vcmp.eq.s32.totalorder %v1373_v36, %v90_v59 }
  0xa1   :  { %v104_v2 = vsel %vm99_vm11, 1.0, %v1249_v5  ;;  %vm948_vm11 = vcmp.eq.s32.totalorder %v1373_v36, 1 }
  0xa2   :  { %v109_v8 = vadd.f32 %v104_v2, %v79_v6 }
  0xa4   :  { %v63_v61 = vpop.permute.xlu1 %62 }
  0xa5   :  { %vm70_vm13 = vcmp.eq.s32.totalorder %v1373_v36, %v63_v61 }
  0xa6   :  { %v75_v4 = vsel %vm70_vm13, 1.0, %v1249_v5 }
  0xa7   :  { %v80_v9 = vadd.f32 %v75_v4, %v50_v3 }
  0xa9   :  { %v120_v7 = vpop.permute.xlu1 %119  ;;  %v110_v15 = vadd.f32 %v105_v10, %v80_v9 }
  0xaa   :  { %vm129_vm15 = vcmp.eq.s32.totalorder %v1373_v36, %v120_v7 }
  0xab   :  { %v134_v11 = vsel %vm129_vm15, 1.0, %v1249_v5 }
  0xac   :  { %v139_v12 = vadd.f32 %v134_v11, %v109_v8 }
  0xad   :  { %v123_v13 = vpop.permute.xlu1 %122 }
  0xae   :  { %vm130_vm1 = vcmp.eq.s32.totalorder %v1373_v36, %v123_v13  ;;  %1088 = vmatmul.mubr.f32.gmra.mxu0 %v139_v12 }
  0xaf   :  { %v135_v16 = vsel %vm130_vm1, 1.0, %v1249_v5  ;;  %1090 = vmatprep.mubr.msk.f32.mxu0 %vm1252_vm0, %v1249_v5 }
  0xb0   :  { %v140_v17 = vadd.f32 %v135_v16, %v110_v15 }
  0xb2   :  { %1091 = vmatmul.mubr.f32.gmra.mxu0 %v140_v17 }
  0xb3   :  { %1093 = vmatprep.mubr.msk.f32.mxu0 %vm1252_vm0, %v1249_v5 }
 0x154   :  { %v1415_v18 = vpop.f32.mrf.mxu0 }
 0x155   :  { %1104 = vmatprep.mubr.msk.f32.mxu1 %vm264_vm2, %v1415_v18 }
 0x156   :  { %v1083_v19 = vpop.f32.mrf.mxu0 }
 0x15f   :  { %v1419_v20 = vpop.f32.mrf.mxu0 }
 0x161   :  { %v1086_v21 = vpop.f32.mrf.mxu0 }
 0x16e   :  { %v1421_v22 = vpop.f32.mrf.mxu0 }
 0x16f   :  { %260 = vrot.lane.b32.xlu0 %v1421_v22, %s1253_s1 }
 0x170   :  { %v1089_v23 = vpop.f32.mrf.mxu0 }
 0x172   :  { %v1424_v24 = vpop.f32.mrf.mxu0 }
 0x173   :  { %256 = vrot.lane.b32.xlu0 %v1415_v18, %s1253_s1  ;;  %262 = vrot.lane.b32.xlu1 %v1424_v24, %s1253_s1 }
 0x174   :  { %v1092_v25 = vpop.f32.mrf.mxu0 }
 0x177   :  { %258 = vrot.lane.b32.xlu1 %v1419_v20, %s1253_s1 }
 0x1e1   :  { %v261_v27 = vpop.permute.xlu0 %260 }
 0x1e5   :  { %v263_v26 = vpop.permute.xlu1 %262  ;;  %v257_v29 = vpop.permute.xlu0 %256 }
 0x1e6   :  { %1096 = vmatprep.subr.msk.mxu1 %vm264_vm2, %v263_v26 }
 0x1e7   :  { %1097 = vmatpush3.xpose.msk.msra.mxu1 %vm264_vm2, %v263_v26 }
 0x1e8   :  { %1098 = vmatprep.subr.msk.mxu1 %vm264_vm2, %v261_v27 }
 0x1e9   :  { %v259_v28 = vpop.permute.xlu1 %258 }
 0x1eb   :  { %1099 = vmatpush3.xpose.msk.msra.mxu1 %vm264_vm2, %v261_v27 }
 0x1ec   :  { %1100 = vmatprep.subr.msk.mxu1 %vm264_vm2, %v259_v28 }
 0x1ef   :  { %1101 = vmatpush3.xpose.msk.msra.mxu1 %vm264_vm2, %v259_v28 }
 0x1f0   :  { %1102 = vmatprep.subr.msk.mxu1 %vm264_vm2, %v257_v29 }
 0x1f3   :  { %1103 = vmatpush3.xpose.msk.msra.mxu1 %vm264_vm2, %v257_v29 }
 0x1f6   :  { %1105 = vmatmul.mubr.msk.f32.vlgmr.msra.gmra.mxu1 %vm264_vm2, %v1419_v20 }
 0x1f7   :  { %1107 = vmatprep.mubr.msk.f32.mxu1 %vm264_vm2, %v1421_v22 }
 0x1fa   :  { %1108 = vmatmul.mubr.msk.f32.gmra.mxu1 %vm264_vm2, %v1424_v24 }
 0x2b6   :  { %v1106_v31 = vpop.f32.mrf.mxu1 }
 0x2b7   :  { %v353_v33 = vadd.f32 %v1106_v31, %v249_v30 }
 0x2b8   :  { %v347_v34 = vpop.f32.mrf.mxu1 }
 0x2b9   :  { %v348_v37 = vadd.f32 %v347_v34, %v248_v32  ;;  %v370_v38 = vsel %vm366_vm3, %v353_v33, -inf }
 0x2ba   :  { %371 = vmax.xlane.f32.xlu0 %v370_v38  ;;  %v1109_v39 = vpop.f32.mrf.mxu1  ;;  %v538_v38 = vld [vmem:[%s1624_s2 + $0x90] sm:$0xff] }
 0x2bb   :  { %v363_v41 = vadd.f32 %v1109_v39, %v251_v35  ;;  %v367_v42 = vsel %vm366_vm3, %v348_v37, -inf  ;;  %v536_v39 = vld [vmem:[%s1624_s2 + $0x80] sm:$0xff] }
 0x2bc   :  { %v357_v43 = vpop.f32.mrf.mxu1  ;;  %368 = vmax.xlane.f32.xlu1 %v367_v42 }
 0x2bd   :  { %v358_v44 = vadd.f32 %v357_v43, %v250_v40  ;;  %v376_v46 = vsel %vm366_vm3, %v363_v41, -inf  ;;  %v537_v43 = vld [vmem:[%s1624_s2 + $0x88] sm:$0xff] }
 0x2bf   :  { %v373_v45 = vsel %vm366_vm3, %v358_v44, -inf }
 0x2c0   :  { %374 = vmax.xlane.f32.xlu0 %v373_v45  ;;  %377 = vmax.xlane.f32.xlu1 %v376_v46 }
 0x2d1   :  { %415 = vrot.lane.b32.xlu1 %v1421_v22, %s1254_s6 }
 0x2d6   :  { %417 = vrot.lane.b32.xlu0 %v1424_v24, %s1254_s6 }
 0x343   :  { %v372_v47 = vpop.xlane.xlu0 %371 }
 0x344   :  { %v380_v48 = vsub.f32 %v353_v33, %v372_v47  ;;  %v539_v33 = vld [vmem:[%s1624_s2 + $0x98] sm:$0xff] }
 0x345   :  { %v369_v49 = vpop.xlane.xlu1 %368 }
 0x346   :  { %v385_v50 = vmul.f32 1.442695, %v380_v48  ;;  %v379_v51 = vsub.f32 %v348_v37, %v369_v49 }
 0x348   :  { %1223 = vpow2.f32 %v385_v50  ;;  %v383_v52 = vmul.f32 1.442695, %v379_v51  ;;  %v18_v51 = vld [vmem:[%s1622_s0 + $0x20] sm:$0xff] }
 0x349   :  { %v375_v53 = vpop.xlane.xlu0 %374  ;;  %v378_v54 = vpop.xlane.xlu1 %377 }
 0x34a   :  { %1225 = vpow2.f32 %v383_v52  ;;  %v381_v55 = vsub.f32 %v358_v44, %v375_v53  ;;  %v382_v56 = vsub.f32 %v363_v41, %v378_v54  ;;  %v1186_v52 = vtrunc.f32 %v18_v51 }
 0x34c   :  { %v387_v57 = vmul.f32 1.442695, %v381_v55  ;;  %v389_v58 = vmul.f32 1.442695, %v382_v56  ;;  %v1187_v53 = vcvt.f32.s32 %v1186_v52 }
 0x34d   :  { %v418_v59 = vpop.permute.xlu0 %417  ;;  %v416_v60 = vpop.permute.xlu1 %415 }
 0x34e   :  { %1227 = vpow2.f32 %v387_v57  ;;  %1110 = vmatprep.subr.mxu1 %v418_v59 }
 0x34f   :  { %1229 = vpow2.f32 %v389_v58  ;;  %1111 = vmatpush3.msra.mxu1 %v418_v59  ;;  %v1520_v59 = vld [vmem:[%s1622_s0 + $0x28] sm:$0xff] }
 0x350   :  { %1112 = vmatprep.subr.mxu1 %v416_v60 }
 0x351   :  { %1113 = vmatpush3.msra.mxu1 %v416_v60 }
 0x355   :  { %v1224_v61 = vpop.eup %1223 }
 0x356   :  { %v394_v62 = vsel %vm366_vm3, %v1224_v61, 0.0 }
 0x357   :  { %v1226_v63 = vpop.eup %1225  ;;  %395 = vadd.xlane.f32.xlu1 %v394_v62 }
 0x358   :  { %v391_v1 = vsel %vm366_vm3, %v1226_v63, 0.0 }
 0x359   :  { %392 = vadd.xlane.f32.xlu0 %v391_v1 }
 0x35b   :  { %v1228_v2 = vpop.eup %1227 }
 0x35c   :  { %v1230_v3 = vpop.eup %1229  ;;  %v397_v4 = vsel %vm366_vm3, %v1228_v2, 0.0 }
 0x35d   :  { %398 = vadd.xlane.f32.xlu0 %v397_v4  ;;  %v400_v6 = vsel %vm366_vm3, %v1230_v3, 0.0 }
 0x35e   :  { %401 = vadd.xlane.f32.xlu1 %v400_v6 }
 0x36f   :  { %413 = vrot.lane.b32.xlu1 %v1419_v20, %s1254_s6 }
 0x373   :  { %429 = vrot.lane.b32.xlu1 %v1424_v24, %s1255_s7  ;;  %411 = vrot.lane.b32.xlu0 %v1415_v18, %s1254_s6 }
 0x377   :  { %425 = vrot.lane.b32.xlu1 %v1419_v20, %s1255_s7  ;;  %427 = vrot.lane.b32.xlu0 %v1421_v22, %s1255_s7 }
 0x37b   :  { %423 = vrot.lane.b32.xlu0 %v1415_v18, %s1255_s7 }
 0x3e0   :  { %v396_v7 = vpop.xlane.xlu1 %395 }
 0x3e1   :  { %1231 = vrcp.f32 %v396_v7 }
 0x3e2   :  { %v393_v8 = vpop.xlane.xlu0 %392 }
 0x3e3   :  { %1233 = vrcp.f32 %v393_v8 }
 0x3e6   :  { %v399_v9 = vpop.xlane.xlu0 %398 }
 0x3e7   :  { %1235 = vrcp.f32 %v399_v9  ;;  %v402_v10 = vpop.xlane.xlu1 %401 }
 0x3e8   :  { %1237 = vrcp.f32 %v402_v10 }
 0x3ea   :  { %v412_v12 = vpop.permute.xlu0 %411 }
 0x3eb   :  { %v414_v11 = vpop.permute.xlu1 %413 }
 0x3ec   :  { %1114 = vmatprep.subr.mxu1 %v414_v11 }
 0x3ed   :  { %1115 = vmatpush3.msra.mxu1 %v414_v11  ;;  %v722_v11 = vld [vmem:[%s1624_s2 + $0x38] sm:$0xff] }
 0x3ee   :  { %1116 = vmatprep.subr.mxu1 %v412_v12  ;;  %v1232_v13 = vpop.eup %1231  ;;  %v428_v22 = vpop.permute.xlu0 %427  ;;  %1141 = vmatpush3.msra.mxu0 %v722_v11 }
 0x3ef   :  { %1117 = vmatpush3.msra.mxu1 %v412_v12  ;;  %v406_v17 = vmul.f32 %v1232_v13, %v1224_v61  ;;  %v430_v23 = vpop.permute.xlu1 %429  ;;  %v721_v12 = vld [vmem:[%s1624_s2 + $0x30] sm:$0xff]  ;;  %1142 = vmatprep.subr.mxu0 %v1249_v5 }
 0x3f0   :  { %v1234_v15 = vpop.eup %1233  ;;  %1124 = vmatprep.subr.mxu1 %v1249_v5  ;;  %1143 = vmatpush3.msra.mxu0 %v721_v12 }
 0x3f1   :  { %v404_v16 = vmul.f32 %v1234_v15, %v1226_v63  ;;  %v720_v15 = vld [vmem:[%s1624_s2 + $0x28] sm:$0xff]  ;;  %1144 = vmatprep.subr.mxu0 %v1249_v5 }
 0x3f2   :  { %v424_v25 = vpop.permute.xlu0 %423  ;;  %1145 = vmatpush3.msra.mxu0 %v720_v15 }
 0x3f3   :  { %1118 = vmatprep.mubr.msk.f32.mxu1 %vm366_vm3, %v404_v16  ;;  %v426_v28 = vpop.permute.xlu1 %425  ;;  %v719_v16 = vld [vmem:[%s1624_s2 + $0x20] sm:$0xff]  ;;  %1146 = vmatprep.subr.mxu0 %v1249_v5 }
 0x3f4   :  { %v1236_v18 = vpop.eup %1235  ;;  %1119 = vmatmul.mubr.msk.f32.vlgmr.msra.gmra.mxu1 %vm366_vm3, %v406_v17  ;;  %v718_v17 = vld [vmem:[%s1624_s2 + $0x18] sm:$0xff]  ;;  %1147 = vmatpush3.msra.mxu0 %v719_v16 }
 0x3f5   :  { %v1238_v19 = vpop.eup %1237  ;;  %v408_v20 = vmul.f32 %v1236_v18, %v1228_v2  ;;  %1148 = vmatprep.subr.mxu0 %v1249_v5  ;;  %v717_v18 = vld [vmem:[%s1624_s2 + $0x10] sm:$0xff] }
 0x3f6   :  { %v410_v21 = vmul.f32 %v1238_v19, %v1230_v3  ;;  %1149 = vmatpush3.msra.mxu0 %v718_v17 }
 0x3f7   :  { %1121 = vmatprep.mubr.msk.f32.mxu1 %vm366_vm3, %v408_v20  ;;  %1150 = vmatprep.subr.mxu0 %v1249_v5  ;;  %v716_v20 = vld [vmem:[%s1624_s2 + $0x8] sm:$0xff] }
 0x3f8   :  { %1122 = vmatmul.mubr.msk.f32.gmra.mxu1 %vm366_vm3, %v410_v21  ;;  %1151 = vmatpush3.msra.mxu0 %v717_v18 }
 0x3f9   :  { %1132 = vmatprep.mubr.msk.f32.mxu1 %vm1252_vm0, %v1249_v5  ;;  %1152 = vmatprep.subr.mxu0 %v1249_v5 }
 0x3fa   :  { %1153 = vmatpush3.msra.mxu0 %v716_v20 }
 0x3fb   :  { %1154 = vmatprep.subr.mxu0 %v1249_v5 }
 0x4b4   :  { %v1120_v24 = vpop.f32.mrf.mxu1 }
 0x4b5   :  { %v519_v30 = vadd.f32 %v1120_v24, %v426_v28  ;;  %v811_v24 = vld [vmem:[%s1624_s2 + $0x70] sm:$0xff] }
 0x4b6   :  { %v513_v26 = vpop.f32.mrf.mxu1 }
 0x4b7   :  { %v514_v27 = vadd.f32 %v513_v26, %v424_v25  ;;  %v533_v40 = vmax.f32 %v519_v30, 0.0  ;;  %v810_v25 = vld [vmem:[%s1624_s2 + $0x68] sm:$0xff]  ;;  %v809_v26 = vld [vmem:[%s1624_s2 + $0x60] sm:$0xff] }
 0x4b8   :  { %v1123_v29 = vpop.f32.mrf.mxu1 }
 0x4b9   :  { %v529_v31 = vadd.f32 %v1123_v29, %v430_v23  ;;  %v532_v34 = vmax.f32 %v514_v27, 0.0  ;;  %v541_v48 = vmul.f32 %v537_v43, %v533_v40  ;;  %v812_v23 = vld [vmem:[%s1624_s2 + $0x78] sm:$0xff] }
 0x4ba   :  { %v523_v32 = vpop.f32.mrf.mxu1  ;;  %v808_v27 = vld [vmem:[%s1624_s2 + $0x58] sm:$0xff] }
 0x4bb   :  { %v535_v35 = vmax.f32 %v529_v31, 0.0  ;;  %v524_v37 = vadd.f32 %v523_v32, %v428_v22  ;;  %v540_v46 = vmul.f32 %v536_v39, %v532_v34  ;;  %v547_v50 = vsel %vm264_vm2, %v541_v48, 0.0  ;;  %v715_v22 = vld [vmem:[%s1624_s2] sm:$0xff]  ;;  %v807_v32 = vld [vmem:[%s1624_s2 + $0x50] sm:$0xff] }
 0x4bc   :  { %1155 = vmatpush3.msra.mxu0 %v715_v22  ;;  %v805_v34 = vld [vmem:[%s1624_s2 + $0x40] sm:$0xff] }
 0x4bd   :  { %v534_v41 = vmax.f32 %v524_v37, 0.0  ;;  %v543_v42 = vmul.f32 %v539_v33, %v535_v35  ;;  %v544_v49 = vsel %vm264_vm2, %v540_v46, 0.0  ;;  %v806_v33 = vld [vmem:[%s1624_s2 + $0x48] sm:$0xff]  ;;  %v981_v35 = vld [vmem:[%s1624_s2 + $0xa4] ss:$0 sm:$0xff] }
 0x4bf   :  { %v553_v44 = vsel %vm264_vm2, %v543_v42, 0.0  ;;  %v542_v45 = vmul.f32 %v538_v38, %v534_v41  ;;  %v983_v41 = vld [vmem:[%s1624_s2 + $0xa5] ss:$0 sm:$0xff] }
 0x4c0   :  { %554 = vadd.xlane.f32.xlu1 %v553_v44 }
 0x4c1   :  { %v550_v47 = vsel %vm264_vm2, %v542_v45, 0.0 }
 0x4c2   :  { %551 = vadd.xlane.f32.xlu0 %v550_v47 }
 0x4c4   :  { %545 = vadd.xlane.f32.xlu1 %v544_v49 }
 0x4c6   :  { %548 = vadd.xlane.f32.xlu0 %v547_v50 }
 0x4d5   :  { %65 = vperm.xlu1 %1218, %v1187_v53  }
 0x4d9   :  { %1219 = vset.pattern.permute.xlu1 %v1247_v0  ;;  %v556_v0 = vld [vmem:[%s1624_s2 + $0xc8] sm:$0xff] }
 0x4da   :  { %95 = vperm.xlu1 %1219, %v1187_v53  }
 0x4dc   :  { %40 = vperm.xlu0 %1217, %v1187_v53  }
 0x4de   :  { %1220 = vset.pattern.permute.xlu1 %v1250_v14  ;;  %v630_v14 = vld [vmem:[%s1624_s2 + $0xa0] sm:$0xf] }
 0x4df   :  { %125 = vperm.xlu1 %1220, %v1187_v53  }
 0x549   :  { %v555_v54 = vpop.xlane.xlu1 %554 }
 0x54a   :  { %1125 = vmatpush3.msra.mxu1 %v555_v54 }
 0x54b   :  { %v552_v55 = vpop.xlane.xlu0 %551  ;;  %1126 = vmatprep.subr.mxu1 %v1249_v5 }
 0x54c   :  { %1127 = vmatpush3.msra.mxu1 %v552_v55 }
 0x54d   :  { %v546_v56 = vpop.xlane.xlu1 %545  ;;  %1128 = vmatprep.subr.mxu1 %v1249_v5 }
 0x54f   :  { %v549_v57 = vpop.xlane.xlu0 %548 }
 0x550   :  { %1129 = vmatpush3.msra.mxu1 %v549_v57 }
 0x551   :  { %1130 = vmatprep.subr.mxu1 %v1249_v5  ;;  %v66_v58 = vpop.permute.xlu1 %65 }
 0x552   :  { %1131 = vmatpush3.msra.mxu1 %v546_v56  ;;  %vm71_vm5 = vcmp.eq.s32.totalorder %v1373_v36, %v66_v58 }
 0x553   :  { %1133 = vmatmul.mubr.msk.f32.vlgmr.msra.gmra.mxu1 %vm366_vm3, %v556_v0  ;;  %1135 = vmatprep.subr.mxu1 %v1249_v5  ;;  %v76_v61 = vsel %vm71_vm5, 1.0, %v1249_v5 }
 0x554   :  { %1136 = vmatpush3.msk.msra.mxu1 %vm635_vm4, %v630_v14  ;;  %1137 = vmatprep.mubr.msk.f32.mxu1 %vm1252_vm0, %v1249_v5 }
 0x555   :  { %v96_v60 = vpop.permute.xlu1 %95  ;;  %1159 = vmatprep.subr.mxu1 %v1249_v5 }
 0x556   :  { %vm101_vm7 = vcmp.eq.s32.totalorder %v1373_v36, %v96_v60 }
 0x557   :  { %v41_v62 = vpop.permute.xlu0 %40  ;;  %1138 = vmatmul.mubr.msk.f32.vlgmr.msra.gmra.mxu1 %vm631_vm6, %v1520_v59  ;;  %v106_v1 = vsel %vm101_vm7, 1.0, %v1249_v5 }
 0x558   :  { %vm46_vm8 = vcmp.eq.s32.totalorder %v1373_v36, %v41_v62  ;;  %1175 = vmatprep.mubr.msk.f32.mxu1 %vm1252_vm0, %v1249_v5  ;;  %1160 = vmatpush3.msra.mxu1 %v812_v23 }
 0x559   :  { %v51_v63 = vsel %vm46_vm8, 1.0, %v1249_v5  ;;  %1161 = vmatprep.subr.mxu1 %v1249_v5 }
 0x55a   :  { %v81_v2 = vadd.f32 %v76_v61, %v51_v63  ;;  %v126_v3 = vpop.permute.xlu1 %125  ;;  %1162 = vmatpush3.msra.mxu1 %v811_v24 }
 0x55b   :  { %vm131_vm9 = vcmp.eq.s32.totalorder %v1373_v36, %v126_v3  ;;  %1163 = vmatprep.subr.mxu1 %v1249_v5  ;;  %v927_v3 = vsub.f32 1.0, %v1520_v59 }
 0x55c   :  { %v111_v4 = vadd.f32 %v106_v1, %v81_v2  ;;  %v136_v6 = vsel %vm131_vm9, 1.0, %v1249_v5  ;;  %1164 = vmatpush3.msra.mxu1 %v810_v25  ;;  %v1260_v1 = vmov 4  }
 0x55d   :  { %1165 = vmatprep.subr.mxu1 %v1249_v5  ;;  %1221 = vset.pattern.permute.xlu0 %v1260_v1 }
 0x55e   :  { %v141_v7 = vadd.f32 %v136_v6, %v111_v4  ;;  %1166 = vmatpush3.msra.mxu1 %v809_v26 }
 0x55f   :  { %1167 = vmatprep.subr.mxu1 %v1249_v5 }
 0x560   :  { %1094 = vmatmul.mubr.f32.gmra.mxu0 %v141_v7  ;;  %1168 = vmatpush3.msra.mxu1 %v808_v27 }
 0x561   :  { %1156 = vmatprep.mubr.msk.f32.mxu0 %vm1252_vm0, %v1249_v5  ;;  %1169 = vmatprep.subr.mxu1 %v1249_v5  ;;  %vm731_vm0 = vcmask 523264  }
 0x562   :  { %1170 = vmatpush3.msra.mxu1 %v807_v32 }
 0x563   :  { %1171 = vmatprep.subr.mxu1 %v1249_v5 }
 0x564   :  { %1172 = vmatpush3.msra.mxu1 %v806_v33 }
 0x565   :  { %1173 = vmatprep.subr.mxu1 %v1249_v5  ;;  %v985_v5 = vld [vmem:[%s1624_s2 + $0xa6] ss:$0 sm:$0xff]  ;;  %s1259_s2 = smov 68  }
 0x566   :  { %1174 = vmatpush3.msra.mxu1 %v805_v34 }
 0x613   :  { %v626_v8 = vpop.f32.mrf.mxu1 }
 0x615   :  { %v1134_v9 = vpop.f32.mrf.mxu1 }
 0x617   :  { %v1535_v10 = vpop.f32.mrf.mxu1 }
 0x618   :  { %710 = vrot.lane.b32.xlu1 %v1535_v10, %s1256_s26 }
 0x619   :  { %v1139_v13 = vpop.f32.mrf.mxu1 }
 0x620   :  { %v244_v19 = vpop.f32.mrf.mxu0 }
 0x621   :  { %903 = vrot.lane.b32.xlu0 %v244_v19, %s1257_s8 }
 0x622   :  { %v1095_v21 = vpop.f32.mrf.mxu0 }
 0x625   :  { %908 = vrot.lane.b32.xlu0 %v626_v8, %s1258_s13 }
 0x68a   :  { %v711_v28 = vpop.permute.xlu1 %710 }
 0x68b   :  { %v713_v29 = vadd.f32 %v711_v28, %v244_v19  ;;  %v1261_v19 = vmov 64  }
 0x68d   :  { %v714_v30 = vmax.f32 %v713_v29, 0.0 }
 0x68f   :  { %729 = vrot.lane.b32.xlu1 %v714_v30, %s1257_s8 }
 0x693   :  { %v904_v48 = vpop.permute.xlu0 %903 }
 0x697   :  { %v909_v52 = vpop.permute.xlu0 %908 }
 0x701   :  { %v730_v31 = vpop.permute.xlu1 %729 }
 0x702   :  { %1157 = vmatmul.mubr.msk.f32.vlgmr.msra.gmra.mxu0 %vm731_vm0, %v730_v31 }
 0x7c2   :  { %v800_v37 = vpop.f32.mrf.mxu0 }
 0x7c3   :  { %v801_v38 = vadd.f32 %v981_v35, %v800_v37 }
 0x7c4   :  { %v1158_v39 = vpop.f32.mrf.mxu0 }
 0x7c5   :  { %v804_v40 = vmax.f32 %v801_v38, 0.0 }
 0x7c7   :  { %1176 = vmatmul.mubr.msk.f32.vlgmr.msra.gmra.mxu1 %vm731_vm0, %v804_v40 }
 0x887   :  { %v887_v42 = vpop.f32.mrf.mxu1 }
 0x888   :  { %v888_v43 = vadd.f32 %v983_v41, %v887_v42 }
 0x889   :  { %v1177_v44 = vpop.f32.mrf.mxu1 }
 0x88a   :  { %v891_v45 = vmax.f32 %v888_v43, 0.0 }
 0x88c   :  { %v897_v46 = vmul.f32 %v985_v5, %v891_v45 }
 0x88e   :  { %v898_v47 = vsel %vm731_vm0, %v897_v46, 0.0 }
 0x88f   :  { %899 = vadd.xlane.f32.xlu1 %v898_v47 }
 0x918   :  { %v900_v49 = vpop.xlane.xlu1 %899 }
 0x919   :  { %v901_v50 = vadd.f32 %v900_v49, %v1535_v10 }
 0x91b   :  { %v906_v51 = vadd.f32 %v904_v48, %v901_v50 }
 0x91d   :  { %v911_v53 = vadd.f32 %v909_v52, %v906_v51 }
 0x91f   :  { %v986_v54 = vmul.f32 -1.442695, %v911_v53 }
 0x921   :  { %1239 = vpow2.f32 %v986_v54 }
 0x92e   :  { %v1240_v55 = vpop.eup %1239 }
 0x92f   :  { %v915_v56 = vadd.f32 1.0, %v1240_v55 }
 0x931   :  { %1241 = vrcp.f32 %v915_v56 }
 0x93e   :  { %v1242_v57 = vpop.eup %1241 }
 0x93f   :  { %v918_v0 = vmax.f32 %v1242_v57, 1e-07 }
 0x941   :  { %v919_v58 = vmin.f32 %v918_v0, 0.9999999 }
 0x943   :  { %1243 = vlog2.f32 %v919_v58  ;;  %v928_v14 = vsub.f32 1.0, %v919_v58 }
 0x945   :  { %1245 = vlog2.f32 %v928_v14 }
 0x950   :  { %v1244_v60 = vpop.eup %1243 }
 0x951   :  { %v921_v61 = vmul.f32 0.6931472, %v1244_v60 }
 0x952   :  { %v1246_v62 = vpop.eup %1245 }
 0x953   :  { %923 = vrot.lane.b32.xlu0 %v921_v61, %s1259_s2  ;;  %v930_v63 = vmul.f32 0.6931472, %v1246_v62 }
 0x957   :  { %932 = vrot.lane.b32.xlu0 %v930_v63, %s1259_s2 }
 0x9c5   :  { %v924_v2 = vpop.permute.xlu0 %923 }
 0x9c6   :  { %v926_v6 = vmul.f32 %v924_v2, %v1520_v59 }
 0x9c9   :  { %v933_v4 = vpop.permute.xlu0 %932 }
 0x9ca   :  { %v935_v7 = vmul.f32 %v933_v4, %v927_v3 }
 0x9cc   :  { %v936_v8 = vadd.f32 %v935_v7, %v926_v6 }
 0x9ce   :  { %v937_v9 = vsub.f32 0.0, %v936_v8 }
 0x9d0   :  { %v939_v10 = vsel %vm938_vm10, %v937_v9, 0.0 }
 0x9d1   :  { %v940_v11 = vrot.slane %v939_v10, 4 }
 0x9d3   :  { %v941_v12 = vadd.f32 %v940_v11, %v939_v10 }
 0x9d5   :  { %v942_v13 = vrot.slane %v941_v12, 2 }
 0x9d7   :  { %v943_v15 = vadd.f32 %v942_v13, %v941_v12 }
 0x9d9   :  { %v944_v16 = vrot.slane %v943_v15, 1 }
 0x9db   :  { %v945_v17 = vadd.f32 %v944_v16, %v943_v15 }
 0x9dd   :  { %v946_v18 = vmul.f32 0.125, %v945_v17 }
 0x9df   :  { %951 = vperm.xlu0 %1221, %v946_v18  }
 0x9e3   :  { %1222 = vset.pattern.permute.xlu0 %v1261_v19 }
 0x9e4   :  { %957 = vperm.xlu0 %1222, %v1242_v57  }
 0xa5a   :  { %v952_v20 = vpop.permute.xlu0 %951 }
 0xa5b   :  { %v954_v59 = vsel %vm948_vm11, %v952_v20, 0.0 }
 0xa5f   :  { %v958_v21 = vpop.permute.xlu0 %957 }
 0xa60   :  { %v960_v22 = vsel %vm947_vm12, %v958_v21, %v954_v59 }
 0xa61   :  { %961 = vst [vmem:[%s1625_s3] sm:$0xff] %v960_v22 }

</bundles_post_ra>
